<compile_context>
chip_gen: v6e
topology: v6e:2x2x1
jax: 0.10.0
libtpu: 0.0.40
codegen_flags: <defaults>
</compile_context>

<pallas_src>
import functools

import jax
import jax.numpy as jnp
import numpy as np
from jax.experimental import pallas as pl
from jax.experimental.pallas import tpu as pltpu

LANE = 128   # vreg lane width
SUB = 8      # vreg sublane width


# ----------------------------------------------------------------------------
# Padding / tiling helpers (all pads are zeros -> results are exact).
# ----------------------------------------------------------------------------
def _round_up(x, m):
    return ((x + m - 1) // m) * m


def _pad2d(a, rows, cols):
    r, c = a.shape
    if r == rows and c == cols:
        return a
    return jnp.pad(a, ((0, rows - r), (0, cols - c)))


def _node_tiling(n):
    """Padded node count + tile used for both the row (M) and adjacency-K axes."""
    if n <= 256:
        p = _round_up(n, SUB)
        return p, p                       # single full-extent tile (layout-legal)
    p = _round_up(n, LANE)
    t = 256 if p % 256 == 0 else 128      # 128/256-aligned tiles, K-tiled accumulation
    return p, t


def _k_tiling(d, cap=512):
    """Padded contraction dim + tile (multiple of 128, <= cap when possible)."""
    p = _round_up(d, LANE)
    if p <= cap:
        return p, p
    for t in (512, 384, 256, 128):
        if p % t == 0:
            return p, t
    return p, LANE


# ----------------------------------------------------------------------------
# Kernel 1: K-tiled matmul with f32 VMEM accumulator (used once for X @ W_enc).
# ----------------------------------------------------------------------------
def _mm_acc_kernel(x_ref, w_ref, o_ref, acc_ref, *, nk):
    @pl.when(pl.program_id(1) == 0)
    def _init():
        acc_ref[...] = jnp.zeros_like(acc_ref)

    acc_ref[...] += jnp.dot(x_ref[...], w_ref[...],
                            preferred_element_type=jnp.float32)

    @pl.when(pl.program_id(1) == nk - 1)
    def _fin():
        o_ref[...] = acc_ref[...]


def matmul_hoisted(x_p, w_p, tm, tk):
    """x_p:(Mp,Kp) @ w_p:(Kp,Np) -> (Mp,Np) f32; operands already zero-padded."""
    Mp, Kp = x_p.shape
    _, Np_ = w_p.shape
    nk = Kp // tk
    # TODO(synk): tile the output lane axis too if hid_dim ever exceeds ~1024.
    return pl.pallas_call(
        functools.partial(_mm_acc_kernel, nk=nk),
        out_shape=jax.ShapeDtypeStruct((Mp, Np_), jnp.float32),
        grid=(Mp // tm, nk),
        in_specs=[
            pl.BlockSpec((tm, tk), lambda i, k: (i, k)),
            pl.BlockSpec((tk, Np_), lambda i, k: (k, 0)),
        ],
        out_specs=pl.BlockSpec((tm, Np_), lambda i, k: (i, 0)),
        scratch_shapes=[pltpu.VMEM((tm, Np_), jnp.float32)],
        compiler_params=pltpu.CompilerParams(
            dimension_semantics=("parallel", "arbitrary")),
    )(x_p, w_p)


# ----------------------------------------------------------------------------
# Kernel 2: fused per-view GCN stage  E[v] = relu(adj[v] @ XW + b), K-tiled.
# ----------------------------------------------------------------------------
def _gcn_views_kernel(adj_ref, xw_ref, b_ref, o_ref, acc_ref, *, nk):
    @pl.when(pl.program_id(2) == 0)
    def _init():
        acc_ref[...] = jnp.zeros_like(acc_ref)

    acc_ref[...] += jnp.dot(adj_ref[0], xw_ref[...],
                            preferred_element_type=jnp.float32)

    @pl.when(pl.program_id(2) == nk - 1)
    def _fin():
        o_ref[0] = jnp.maximum(acc_ref[...] + b_ref[...], 0.0)


def gcn_all_views(adj_p, xw_p, b_p, t_node, operand_dtype=jnp.float32):
    """adj_p:(V,Np,Np), xw_p:(Np,Hp), b_p:(1,Hp) -> E:(V,Np,Hp) f32 (view-major)."""
    V, Np_, _ = adj_p.shape
    Hp = xw_p.shape[1]
    nk = Np_ // t_node
    # On v6e/v7x large graphs, operand_dtype=jnp.bfloat16 halves HBM/VMEM traffic
    # (accumulation stays f32); default f32 keeps the reference check tight.
    adj_in = adj_p.astype(operand_dtype)
    xw_in = xw_p.astype(operand_dtype)
    return pl.pallas_call(
        functools.partial(_gcn_views_kernel, nk=nk),
        out_shape=jax.ShapeDtypeStruct((V, Np_, Hp), jnp.float32),
        grid=(V, Np_ // t_node, nk),
        in_specs=[
            pl.BlockSpec((1, t_node, t_node), lambda v, i, k: (v, i, k)),
            pl.BlockSpec((t_node, Hp), lambda v, i, k: (k, 0)),
            pl.BlockSpec((1, Hp), lambda v, i, k: (0, 0)),
        ],
        out_specs=pl.BlockSpec((1, t_node, Hp), lambda v, i, k: (v, i, 0)),
        scratch_shapes=[pltpu.VMEM((t_node, Hp), jnp.float32)],
        compiler_params=pltpu.CompilerParams(
            dimension_semantics=("parallel", "parallel", "arbitrary")),
    )(adj_in, xw_in, b_p)


# ----------------------------------------------------------------------------
# Kernel 3: fused semantic-attention scoring with in-kernel row reduction.
#   score_sum[v] = sum_{n < n_nodes} tanh(E[v,n,:] @ Wa + ba) . q
# Output is a tiny (V, 8, Ap) slab (row 0 holds the per-lane partial sums).
# ----------------------------------------------------------------------------
def _att_score_kernel(e_ref, wa_ref, ba_ref, qrow_ref, s_ref, acc_ref,
                      *, n_nodes, tm, nt):
    i = pl.program_id(1)

    @pl.when(i == 0)
    def _init():
        acc_ref[...] = jnp.zeros_like(acc_ref)

    t = jnp.tanh(jnp.dot(e_ref[0], wa_ref[...],
                         preferred_element_type=jnp.float32) + ba_ref[...])
    row = i * tm + jax.lax.broadcasted_iota(jnp.int32, t.shape, 0)
    t = jnp.where(row < n_nodes, t, 0.0)          # mask pad rows / rows >= n_nodes
    acc_ref[...] += jnp.sum(t * qrow_ref[...], axis=0, keepdims=True)   # (1, Ap)

    @pl.when(i == nt - 1)
    def _fin():
        s_ref[0] = jnp.broadcast_to(acc_ref[...], (s_ref.shape[1], s_ref.shape[2]))


def semantic_scores(e_p, wa_p, ba_p, qrow_p, t_node, n_nodes):
    V, Np_, Hp = e_p.shape
    Ap = wa_p.shape[1]
    nt = Np_ // t_node
    s = pl.pallas_call(
        functools.partial(_att_score_kernel, n_nodes=n_nodes, tm=t_node, nt=nt),
        out_shape=jax.ShapeDtypeStruct((V, SUB, Ap), jnp.float32),
        grid=(V, nt),
        in_specs=[
            pl.BlockSpec((1, t_node, Hp), lambda v, i: (v, i, 0)),
            pl.BlockSpec((Hp, Ap), lambda v, i: (0, 0)),
            pl.BlockSpec((1, Ap), lambda v, i: (0, 0)),
            pl.BlockSpec((1, Ap), lambda v, i: (0, 0)),
        ],
        out_specs=pl.BlockSpec((1, SUB, Ap), lambda v, i: (v, 0, 0)),
        scratch_shapes=[pltpu.VMEM((1, Ap), jnp.float32)],
        compiler_params=pltpu.CompilerParams(
            dimension_semantics=("parallel", "arbitrary")),
    )(e_p, wa_p, ba_p, qrow_p)
    return jnp.sum(s[:, 0, :], axis=1)            # (V,) tiny glue reduce


# ----------------------------------------------------------------------------
# Kernel 4: attention-weighted sum over views on the view-major slab.
#   out[n, h] = sum_v beta[v] * E[v, n, h]
# ----------------------------------------------------------------------------
def _wsum_kernel(beta_ref, e_ref, o_ref):
    V = e_ref.shape[0]
    acc = beta_ref[0, 0] * e_ref[0]               # leading-axis view: free slice
    for v in range(1, V):                         # V small & static -> unrolled
        acc = acc + beta_ref[0, v] * e_ref[v]
    o_ref[...] = acc


def weighted_view_sum(beta, e_p, t_node):
    """beta:(1,V) f32 (SMEM), e_p:(V,Np,Hp) f32 -> (Np,Hp) f32."""
    V, Np_, Hp = e_p.shape
    return pl.pallas_call(
        _wsum_kernel,
        out_shape=jax.ShapeDtypeStruct((Np_, Hp), jnp.float32),
        grid=(Np_ // t_node,),
        in_specs=[
            pl.BlockSpec(memory_space=pltpu.MemorySpace.SMEM),
            pl.BlockSpec((V, t_node, Hp), lambda i: (0, i, 0)),
        ],
        out_specs=pl.BlockSpec((t_node, Hp), lambda i: (i, 0)),
        compiler_params=pltpu.CompilerParams(dimension_semantics=("parallel",)),
    )(beta, e_p)


# ----------------------------------------------------------------------------
# AggHG forward built on the kernels
# ----------------------------------------------------------------------------
def agg_hg_forward(params, feature, adj_new_list, labels, chosen_tail_lists,
                   first_neighbor_lists, second_neighbor_lists, center_dict_lists,
                   matmul_operand_dtype=jnp.float32):
    # TODO(synk): DynamicSmote source not provided; treated as identity on the
    # feature matrix (labels / tail / neighbor / center inputs pass through unused).
    # Identity also makes X @ W_enc identical for every view -> hoisted below.
    del labels, chosen_tail_lists, first_neighbor_lists, second_neighbor_lists, center_dict_lists

    V = len(adj_new_list)
    N_total, F = feature.shape
    H = params["W_enc"].shape[1]
    A = params["Wa"].shape[1]
    n_nodes = int(params["n_nodes"])
    f32 = jnp.float32

    # Lane-dense / MXU-friendly padded dims (zero padding -> exact results).
    Np_, t_node = _node_tiling(N_total)
    Fp, t_f = _k_tiling(F)
    Hp = _round_up(H, LANE)
    Ap = _round_up(A, LANE)

    x_p = _pad2d(feature.astype(f32), Np_, Fp)
    W_p = _pad2d(params["W_enc"].astype(f32), Fp, Hp)
    b_p = _pad2d(params["b_enc"].astype(f32).reshape(1, -1), 1, Hp)
    adj_p = jnp.stack([_pad2d(a.astype(f32), Np_, Np_) for a in adj_new_list])   # (V,Np,Np)
    Wa_p = _pad2d(params["Wa"].astype(f32), Hp, Ap)
    ba_p = _pad2d(params["ba"].astype(f32).reshape(1, -1), 1, Ap)
    q_p = _pad2d(params["q"].astype(f32).reshape(1, -1), 1, Ap)

    # 1) hoisted X @ W_enc (shared by every view)
    xw_p = matmul_hoisted(x_p, W_p, t_node, t_f)                          # (Np, Hp)

    # 2) fused per-view GCN: relu(A_v @ XW + b), view-major output slab
    e_p = gcn_all_views(adj_p, xw_p, b_p, t_node,
                        operand_dtype=matmul_operand_dtype)               # (V, Np, Hp)

    # 3) fused semantic-attention scoring (row-reduced in kernel) + tiny softmax glue
    score_sum = semantic_scores(e_p, Wa_p, ba_p, q_p, t_node, n_nodes)    # (V,)
    beta = jax.nn.softmax(score_sum / float(n_nodes))                     # mean over nodes

    # 4) attention-weighted sum over views
    out_p = weighted_view_sum(beta.reshape(1, V).astype(f32), e_p, t_node)  # (Np, Hp)

    embed_ds_list = [e_p[v, :N_total, :H] for v in range(V)]
    output = out_p[:n_nodes, :H]
    return embed_ds_list, output


# ----------------------------------------------------------------------------
# Pure-JAX reference (numerical sanity check)
# ----------------------------------------------------------------------------
def ref_forward(params, feature, adj_new_list):
    hp = jax.lax.Precision.HIGHEST
    mm = lambda a, b: jnp.dot(a, b, precision=hp)
    embed_list = []
    for adj in adj_new_list:
        h = jnp.maximum(mm(adj, mm(feature, params["W_enc"])) + params["b_enc"], 0.0)
        embed_list.append(h)
    N = params["n_nodes"]
    embeds = jnp.stack([e[:N] for e in embed_list], axis=1)
    t = jnp.tanh(mm(embeds.reshape(-1, embeds.shape[-1]), params["Wa"]) + params["ba"])
    scores = mm(t, params["q"]).reshape(N, -1)
    beta = jax.nn.softmax(scores.mean(axis=0))
    out = jnp.einsum("nvh,v->nh", embeds, beta)
    return embed_list, out


# ----------------------------------------------------------------------------
if __name__ == "__main__":
    key = jax.random.PRNGKey(0)
    N, F, H, A, V = 32, 16, 32, 16, 2  # n_nodes, fea_dim, hid_dim, att_dim, #views

    ks = jax.random.split(key, 10)

    # Parameter shapes from the module __init__:
    #   encoder GCN weight (F, H) + bias, SemanticAggregate: Wa (H, A), ba (A), q (A, 1)
    params = {
        "W_enc": 0.1 * jax.random.normal(ks[0], (F, H), jnp.float32),
        "b_enc": 0.1 * jax.random.normal(ks[1], (1, H), jnp.float32),
        "Wa": 0.1 * jax.random.normal(ks[2], (H, A), jnp.float32),
        "ba": 0.1 * jax.random.normal(ks[3], (1, A), jnp.float32),
        "q": 0.1 * jax.random.normal(ks[4], (A, 1), jnp.float32),
        "n_nodes": N,
    }

    # Example inputs
    feature = jax.random.normal(ks[5], (N, F), jnp.float32)
    adj_new_list = []
    for i in range(V):
        mask = (jax.random.uniform(ks[6 + i], (N, N)) > 0.8).astype(jnp.float32)
        adj = mask + jnp.eye(N, dtype=jnp.float32)
        adj = adj / jnp.sum(adj, axis=1, keepdims=True)   # row-normalized
        adj_new_list.append(adj)
    labels = jax.random.randint(ks[8], (N,), 0, 4)
    chosen_tail_lists = [jnp.arange(4, dtype=jnp.int32)] * V
    first_neighbor_lists = [jnp.arange(4, dtype=jnp.int32)] * V
    second_neighbor_lists = [jnp.arange(4, dtype=jnp.int32)] * V
    center_dict_lists = [jnp.zeros((4,), jnp.int32)] * V

    embed_ds_list, output = agg_hg_forward(
        params, feature, adj_new_list, labels, chosen_tail_lists,
        first_neighbor_lists, second_neighbor_lists, center_dict_lists)
    jax.block_until_ready(output)
    for e in embed_ds_list:
        jax.block_until_ready(e)

    # Sanity check against pure-JAX reference
    ref_embeds, ref_out = ref_forward(params, feature, adj_new_list)
    for e, er in zip(embed_ds_list, ref_embeds):
        np.testing.assert_allclose(np.asarray(e), np.asarray(er), rtol=1e-2, atol=1e-2)
    np.testing.assert_allclose(np.asarray(output), np.asarray(ref_out), rtol=1e-2, atol=1e-2)

    assert output.shape == (N, H) and all(e.shape == (N, H) for e in embed_ds_list)
    print("KERNEL_OK")
</pallas_src>

<mosaic_0001>
module attributes {stable_mosaic.version = 11 : i64} {
  func.func @_mm_acc_kernel(%arg0: i32, %arg1: i32, %arg2: memref<32x128xf32, #tpu.memory_space<vmem>>, %arg3: memref<128x128xf32, #tpu.memory_space<vmem>>, %arg4: memref<32x128xf32, #tpu.memory_space<vmem>>, %arg5: memref<32x128xf32, #tpu.memory_space<vmem>>) attributes {dimension_semantics = [#tpu.dimension_semantics<parallel>, #tpu.dimension_semantics<arbitrary>], iteration_bounds = array<i64: 1, 1>, scalar_prefetch = 0 : i64, scratch_operands = 1 : i64, tpu.core_type = #tpu.core_type<tc>, window_params = [{transform_indices = @transform_0, window_bounds = array<i64: 32, 128>}, {transform_indices = @transform_1, window_bounds = array<i64: 128, 128>}, {transform_indices = @transform_2, window_bounds = array<i64: 32, 128>}]} {
    %c0_i32 = arith.constant 0 : i32
    %0 = arith.cmpi eq, %arg1, %c0_i32 : i32
    %1 = arith.extui %0 : i1 to i32
    %c0_i32_0 = arith.constant 0 : i32
    %2 = arith.cmpi ne, %1, %c0_i32_0 : i32
    scf.if %2 {
      %cst_10 = arith.constant 0.000000e+00 : f32
      %12 = vector.broadcast %cst_10 : f32 to vector<32x128xf32>
      %c0_11 = arith.constant 0 : index
      %c0_12 = arith.constant 0 : index
      %13 = vector.load %arg5[%c0_11, %c0_12] : memref<32x128xf32, #tpu.memory_space<vmem>>, vector<32x128xf32>
      tpu.vector_store %arg5[%c0_11, %c0_12], %12 {strides = array<i32>} : memref<32x128xf32, #tpu.memory_space<vmem>>, vector<32x128xf32>,
    } else {
    }
    %c0 = arith.constant 0 : index
    %c0_1 = arith.constant 0 : index
    %3 = vector.load %arg5[%c0, %c0_1] : memref<32x128xf32, #tpu.memory_space<vmem>>, vector<32x128xf32>
    %c0_2 = arith.constant 0 : index
    %c0_3 = arith.constant 0 : index
    %4 = vector.load %arg2[%c0_2, %c0_3] : memref<32x128xf32, #tpu.memory_space<vmem>>, vector<32x128xf32>
    %c0_4 = arith.constant 0 : index
    %c0_5 = arith.constant 0 : index
    %5 = vector.load %arg3[%c0_4, %c0_5] : memref<128x128xf32, #tpu.memory_space<vmem>>, vector<128x128xf32>
    %cst = arith.constant dense<0.000000e+00> : vector<32x128xf32>
    %6 = tpu.matmul %4, %5, %cst {dimension_numbers = #tpu.dot_dimension_numbers<[1], [0], [0], [1], [0, 0, 1, 1], [], []>} : vector<32x128xf32>, vector<128x128xf32>, vector<32x128xf32> -> vector<32x128xf32>
    %7 = arith.addf %3, %6 : vector<32x128xf32>
    %c0_6 = arith.constant 0 : index
    %c0_7 = arith.constant 0 : index
    %8 = vector.load %arg5[%c0_6, %c0_7] : memref<32x128xf32, #tpu.memory_space<vmem>>, vector<32x128xf32>
    tpu.vector_store %arg5[%c0_6, %c0_7], %7 {strides = array<i32>} : memref<32x128xf32, #tpu.memory_space<vmem>>, vector<32x128xf32>,
    %c0_i32_8 = arith.constant 0 : i32
    %9 = arith.cmpi eq, %arg1, %c0_i32_8 : i32
    %10 = arith.extui %9 : i1 to i32
    %c0_i32_9 = arith.constant 0 : i32
    %11 = arith.cmpi ne, %10, %c0_i32_9 : i32
    scf.if %11 {
      %c0_10 = arith.constant 0 : index
      %c0_11 = arith.constant 0 : index
      %12 = vector.load %arg5[%c0_10, %c0_11] : memref<32x128xf32, #tpu.memory_space<vmem>>, vector<32x128xf32>
      %c0_12 = arith.constant 0 : index
      %c0_13 = arith.constant 0 : index
      %13 = vector.load %arg4[%c0_12, %c0_13] : memref<32x128xf32, #tpu.memory_space<vmem>>, vector<32x128xf32>
      tpu.vector_store %arg4[%c0_12, %c0_13], %12 {strides = array<i32>} : memref<32x128xf32, #tpu.memory_space<vmem>>, vector<32x128xf32>,
    } else {
    }
    return
  }
  func.func @transform_0(%arg0: i32, %arg1: i32) -> (i32, i32) {
    %c0_i32 = arith.constant 0 : i32
    return %arg0, %arg1 : i32, i32
  }
  func.func @transform_1(%arg0: i32, %arg1: i32) -> (i32, i32) {
    %c0_i32 = arith.constant 0 : i32
    %c0_i32_0 = arith.constant 0 : i32
    return %arg1, %c0_i32 : i32, i32
  }
  func.func @transform_2(%arg0: i32, %arg1: i32) -> (i32, i32) {
    %c0_i32 = arith.constant 0 : i32
    %c0_i32_0 = arith.constant 0 : i32
    return %arg0, %c0_i32 : i32, i32
  }
}

</mosaic_0001>

<bundles_post_ra>
// kernel: tpu_custom_call.1
= control target key start
LH: loop header
LB: loop body
LE: loop exit
PB: predicated region body
PF: predicated region fallthrough
CT: control target
= control target key end

     0   :  { %7 = vsyncpa [#allocation4], 0  ;;  %s393_s0 = inlined_call_operand.hbm [shape: f32[32,128], index: 0, kind: input, shape index: {}]   ;;  %s394_s1 = inlined_call_operand.hbm [shape: f32[128,128], index: 1, kind: input, shape index: {}]   ;;  %s395_s2 = inlined_call_operand.hbm [shape: f32[32,128], index: 2, kind: output, shape index: {}]  }
   0x1   :  { %8 = vsyncpa [#allocation7], 0 }
   0x2   :  { %9 = vsyncpa [#allocation5], 0  ;;  %s355_s9 = smov [#allocation3]  }
   0x3   :  { %s15_s10 = sshll.u32 %s355_s9, 4  ;;  %s16_s10 = int_to_ptr.vmem [resolvable:$true] %s15_s10 }
   0x4   :  { %s297_s11 = scalar_lea.vmem %s16_s10, 512  ;;  %p302_p1 = scmp.lt.s32.totalorder %s16_s10, %s16_s10 }
   0x5   :  { %p298_p0 = scmp.ne.s32.totalorder %s16_s10, %s297_s11  ;;  %p303_p2 = scmp.lt.s32.totalorder %s297_s11, %s297_s11 }
   0x7   :  { %p304_p3 = por %p303_p2, %p302_p1 }
   0x9   :  { %p305_p4 = pnand %p304_p3, %p298_p0 }
   0xb   :  { %308 = shalt.err (!%p305_p4)
}
   0xc   :  { %s356_s12 = smov 128   ;;  %s357_s13 = smov 8  }
   0xd   :  { %21 = dma.hbm_to_vmem [thread:$0]  %s393_s0, 512, %s16_s10, [#allocation4], %s356_s12, %s356_s12, %s357_s13  }
   0xe   :  { %s358_s16 = smov [#allocation6]  }
   0xf   :  { %s27_s17 = sshll.u32 %s358_s16, 4  ;;  %s28_s17 = int_to_ptr.vmem [resolvable:$true] %s27_s17 }
  0x10   :  { %s317_s18 = scalar_lea.vmem %s28_s17, 2048  ;;  %p322_p6 = scmp.lt.s32.totalorder %s28_s17, %s28_s17 }
  0x11   :  { %p318_p5 = scmp.ne.s32.totalorder %s28_s17, %s317_s18  ;;  %p323_p7 = scmp.lt.s32.totalorder %s317_s18, %s317_s18 }
  0x13   :  { %p324_p8 = por %p323_p7, %p322_p6 }
  0x15   :  { %p325_p9 = pnand %p324_p8, %p318_p5 }
  0x17   :  { %328 = shalt.err (!%p325_p9)
}
  0x18   :  { %33 = dma.hbm_to_vmem [thread:$0]  %s394_s1, 2048, %s28_s17, [#allocation7], %s356_s12, %s356_s12, %s357_s13  }
  0x19   :  { %349 = dma.done.wait [#allocation4], 512  }
  0x1a   :  { %350 = vsyncadd [#allocation4], 4294966784 }
  0x1b   :  { %351 = dma.done.wait [#allocation7], 2048  }
  0x1c   :  { %352 = vsyncadd [#allocation7], 4294965248  ;;  %v71_v0 = vld [vmem:[#allocation6 + $0x78] sm:$0xff]  ;;  %v70_v1 = vld [vmem:[#allocation6 + $0x70] sm:$0xff]  ;;  %s359_s0 = smov [#allocation8]  }
  0x1d   :  { %214 = vmatprep.subr.mxu0 %v71_v0  ;;  %252 = vmatprep.subr.mxu1 %v71_v0  ;;  %v69_v2 = vld [vmem:[#allocation6 + $0x68] sm:$0xff]  ;;  %v68_v3 = vld [vmem:[#allocation6 + $0x60] sm:$0xff]  ;;  %v67_v4 = vld [vmem:[#allocation6 + $0x58] sm:$0xff]  ;;  %s181_s1 = sshll.u32 %s359_s0, 4  ;;  %s182_s1 = int_to_ptr.vmem [resolvable:$true] %s181_s1 }
  0x1e   :  { %215 = vmatpush3.msra.mxu0 %v71_v0  ;;  %268 = vmatpush3.msra.mxu1 %v71_v0  ;;  %v66_v5 = vld [vmem:[#allocation6 + $0x50] sm:$0xff]  ;;  %v65_v6 = vld [vmem:[#allocation6 + $0x48] sm:$0xff]  ;;  %v64_v7 = vld [vmem:[#allocation6 + $0x40] sm:$0xff]  ;;  %s329_s21 = scalar_lea.vmem %s182_s1, 512  ;;  %p334_p11 = scmp.lt.s32.totalorder %s182_s1, %s182_s1 }
  0x1f   :  { %216 = vmatprep.subr.mxu0 %v70_v1  ;;  %253 = vmatprep.subr.mxu1 %v70_v1  ;;  %v63_v8 = vld [vmem:[#allocation6 + $0x38] sm:$0xff]  ;;  %v62_v9 = vld [vmem:[#allocation6 + $0x30] sm:$0xff]  ;;  %v61_v10 = vld [vmem:[#allocation6 + $0x28] sm:$0xff]  ;;  %p330_p10 = scmp.ne.s32.totalorder %s182_s1, %s329_s21  ;;  %p335_p12 = scmp.lt.s32.totalorder %s329_s21, %s329_s21 }
  0x20   :  { %217 = vmatpush3.msra.mxu0 %v70_v1  ;;  %269 = vmatpush3.msra.mxu1 %v70_v1  ;;  %v60_v11 = vld [vmem:[#allocation6 + $0x20] sm:$0xff]  ;;  %v59_v12 = vld [vmem:[#allocation6 + $0x18] sm:$0xff]  ;;  %v58_v13 = vld [vmem:[#allocation6 + $0x10] sm:$0xff] }
  0x21   :  { %218 = vmatprep.subr.mxu0 %v69_v2  ;;  %254 = vmatprep.subr.mxu1 %v69_v2  ;;  %v57_v14 = vld [vmem:[#allocation6 + $0x8] sm:$0xff]  ;;  %v56_v15 = vld [vmem:[#allocation6] sm:$0xff]  ;;  %v54_v17 = vld [vmem:[#allocation3 + $0x10] sm:$0xff]  ;;  %p336_p13 = por %p335_p12, %p334_p11 }
  0x22   :  { %219 = vmatpush3.msra.mxu0 %v69_v2  ;;  %270 = vmatpush3.msra.mxu1 %v69_v2  ;;  %v52_v16 = vld [vmem:[#allocation3] sm:$0xff]  ;;  %v53_v18 = vld [vmem:[#allocation3 + $0x8] sm:$0xff]  ;;  %v55_v19 = vld [vmem:[#allocation3 + $0x18] sm:$0xff] }
  0x23   :  { %220 = vmatprep.subr.mxu0 %v68_v3  ;;  %255 = vmatprep.subr.mxu1 %v68_v3  ;;  %p337_p0 = pnand %p336_p13, %p330_p10 }
  0x24   :  { %221 = vmatpush3.msra.mxu0 %v68_v3  ;;  %271 = vmatpush3.msra.mxu1 %v68_v3 }
  0x25   :  { %222 = vmatprep.subr.mxu0 %v67_v4  ;;  %256 = vmatprep.subr.mxu1 %v67_v4 }
  0x26   :  { %223 = vmatpush3.msra.mxu0 %v67_v4  ;;  %272 = vmatpush3.msra.mxu1 %v67_v4 }
  0x27   :  { %224 = vmatprep.subr.mxu0 %v66_v5  ;;  %257 = vmatprep.subr.mxu1 %v66_v5 }
  0x28   :  { %225 = vmatpush3.msra.mxu0 %v66_v5  ;;  %273 = vmatpush3.msra.mxu1 %v66_v5 }
  0x29   :  { %226 = vmatprep.subr.mxu0 %v65_v6  ;;  %258 = vmatprep.subr.mxu1 %v65_v6 }
  0x2a   :  { %227 = vmatpush3.msra.mxu0 %v65_v6  ;;  %274 = vmatpush3.msra.mxu1 %v65_v6 }
  0x2b   :  { %228 = vmatprep.subr.mxu0 %v64_v7  ;;  %259 = vmatprep.subr.mxu1 %v64_v7 }
  0x2c   :  { %229 = vmatpush3.msra.mxu0 %v64_v7  ;;  %275 = vmatpush3.msra.mxu1 %v64_v7 }
  0x2d   :  { %230 = vmatprep.subr.mxu0 %v63_v8  ;;  %260 = vmatprep.subr.mxu1 %v63_v8 }
  0x2e   :  { %231 = vmatpush3.msra.mxu0 %v63_v8  ;;  %276 = vmatpush3.msra.mxu1 %v63_v8 }
  0x2f   :  { %232 = vmatprep.subr.mxu0 %v62_v9  ;;  %261 = vmatprep.subr.mxu1 %v62_v9 }
  0x30   :  { %233 = vmatpush3.msra.mxu0 %v62_v9  ;;  %277 = vmatpush3.msra.mxu1 %v62_v9 }
  0x31   :  { %234 = vmatprep.subr.mxu0 %v61_v10  ;;  %262 = vmatprep.subr.mxu1 %v61_v10 }
  0x32   :  { %235 = vmatpush3.msra.mxu0 %v61_v10  ;;  %278 = vmatpush3.msra.mxu1 %v61_v10 }
  0x33   :  { %236 = vmatprep.subr.mxu0 %v60_v11  ;;  %263 = vmatprep.subr.mxu1 %v60_v11 }
  0x34   :  { %237 = vmatpush3.msra.mxu0 %v60_v11  ;;  %279 = vmatpush3.msra.mxu1 %v60_v11 }
  0x35   :  { %238 = vmatprep.subr.mxu0 %v59_v12  ;;  %264 = vmatprep.subr.mxu1 %v59_v12 }
  0x36   :  { %239 = vmatpush3.msra.mxu0 %v59_v12  ;;  %280 = vmatpush3.msra.mxu1 %v59_v12 }
  0x37   :  { %240 = vmatprep.subr.mxu0 %v58_v13  ;;  %265 = vmatprep.subr.mxu1 %v58_v13 }
  0x38   :  { %241 = vmatpush3.msra.mxu0 %v58_v13  ;;  %281 = vmatpush3.msra.mxu1 %v58_v13 }
  0x39   :  { %242 = vmatprep.subr.mxu0 %v57_v14  ;;  %266 = vmatprep.subr.mxu1 %v57_v14 }
  0x3a   :  { %243 = vmatpush3.msra.mxu0 %v57_v14  ;;  %282 = vmatpush3.msra.mxu1 %v57_v14 }
  0x3b   :  { %244 = vmatprep.subr.mxu0 %v56_v15  ;;  %267 = vmatprep.subr.mxu1 %v56_v15 }
  0x3c   :  { %245 = vmatpush3.msra.mxu0 %v56_v15  ;;  %283 = vmatpush3.msra.mxu1 %v56_v15 }
  0x3d   :  { %246 = vmatprep.mubr.f32.mxu0 %v52_v16  ;;  %249 = vmatprep.mubr.f32.mxu1 %v54_v17 }
  0x3e   :  { %247 = vmatmul.mubr.f32.vlgmr.msra.gmra.mxu0 %v53_v18  ;;  %250 = vmatmul.mubr.f32.vlgmr.msra.gmra.mxu1 %v55_v19 }
  0xfe   :  { %v248_v20 = vpop.f32.mrf.mxu0  ;;  %v251_v21 = vpop.f32.mrf.mxu1 }
  0xff   :  { %173 = vst [vmem:[#allocation8 + $0x8] sm:$0xff] %v248_v20  ;;  %175 = vst [vmem:[#allocation8 + $0x18] sm:$0xff] %v251_v21 }
 0x100   :  { %v138_v22 = vpop.f32.mrf.mxu0  ;;  %v148_v23 = vpop.f32.mrf.mxu1 }
 0x101   :  { %172 = vst [vmem:[#allocation8] sm:$0xff] %v138_v22  ;;  %174 = vst [vmem:[#allocation8 + $0x10] sm:$0xff] %v148_v23 }
 0x102   :  { %340 = shalt.err (!%p337_p0)
}
 0x103   :  { %187 = dma.vmem_to_hbm [thread:$0]  %s182_s1, 512, %s395_s2, [#allocation5], %s356_s12, %s356_s12, %s357_s13  }
 0x104   :  { %353 = dma.done.wait [#allocation5], 512  }
 0x105   :  { %354 = vsyncadd [#allocation5], 4294966784 }
 0x106   :  { %191 = vsyncpa [#allocation4], 1 }
 0x107   :  { %192 = vsyncpa [#allocation7], 1 }
 0x108   :  { %193 = vsyncpa [#allocation5], 1 }

</bundles_post_ra>
